<compile_context>
chip_gen: v5e
topology: v5e:2x2
jax: 0.10.0
libtpu: 0.0.40
codegen_flags: <defaults>
</compile_context>

<pallas_src>
import functools

import numpy as np
import jax
import jax.numpy as jnp
from jax.experimental import pallas as pl
from jax.experimental.pallas import tpu as pltpu

BN_EPS = 1e-5


def _round_up(v, m):
    return (v + m - 1) // m * m


# ----------------------------------------------------------------------------
# Pallas kernels: fused (bf16 matmul -> +shift -> [+residual] -> [relu])
# ----------------------------------------------------------------------------
def _mm_kernel(x_ref, w_ref, shift_ref, o_ref, *, relu):
    y = jnp.dot(x_ref[...], w_ref[...], preferred_element_type=jnp.float32)
    y = y + shift_ref[...]
    if relu:
        y = jnp.maximum(y, 0.0)
    o_ref[...] = y.astype(o_ref.dtype)


def _mm_res_kernel(x_ref, w_ref, shift_ref, res_ref, o_ref):
    y = jnp.dot(x_ref[...], w_ref[...], preferred_element_type=jnp.float32)
    y = y + shift_ref[...] + res_ref[...].astype(jnp.float32)
    o_ref[...] = jnp.maximum(y, 0.0).astype(o_ref.dtype)


def fused_matmul(x, w, shift, residual=None, relu=True,
                 out_dtype=jnp.float32, tile_m=256):
    """y = x @ w (+shift) (+residual) (relu).  w/shift are pre-padded to Npad%128==0.

    x: (M, K) any float dtype (cast to bf16), w: (K, Npad) bf16,
    shift: (1, Npad) f32, residual: (M, Npad) or None.  Returns (M, Npad).
    """
    M, K = x.shape
    K2, Npad = w.shape
    assert K == K2 and Npad % 128 == 0

    # Tile over M (rows); pad M so the grid divides evenly.
    if M <= tile_m:
        tm = _round_up(max(M, 8), 8)
    else:
        tm = tile_m
    Mp = _round_up(M, tm)

    xb = x.astype(jnp.bfloat16)
    if Mp != M:
        xb = jnp.pad(xb, ((0, Mp - M), (0, 0)))

    args = [xb, w.astype(jnp.bfloat16), shift.astype(jnp.float32)]
    in_specs = [
        pl.BlockSpec((tm, K), lambda i: (i, 0)),
        pl.BlockSpec((K, Npad), lambda i: (0, 0)),
        pl.BlockSpec((1, Npad), lambda i: (0, 0)),
    ]
    if residual is not None:
        rb = residual
        if Mp != M:
            rb = jnp.pad(rb, ((0, Mp - M), (0, 0)))
        args.append(rb)
        in_specs.append(pl.BlockSpec((tm, Npad), lambda i: (i, 0)))
        kernel = _mm_res_kernel
    else:
        kernel = functools.partial(_mm_kernel, relu=relu)

    out = pl.pallas_call(
        kernel,
        out_shape=jax.ShapeDtypeStruct((Mp, Npad), out_dtype),
        grid=(Mp // tm,),
        in_specs=in_specs,
        out_specs=pl.BlockSpec((tm, Npad), lambda i: (i, 0)),
        compiler_params=pltpu.CompilerParams(
            dimension_semantics=("parallel",),
            vmem_limit_bytes=32 * 1024 * 1024,
        ),
    )(*args)
    return out[:M] if Mp != M else out


# ----------------------------------------------------------------------------
# Glue: NHWC im2col (pure layout plumbing at JAX level; k/stride/pad are
# static Python ints, so this traces fine under jit)
# ----------------------------------------------------------------------------
def im2col_nhwc(x, k, stride, pad):
    """x: (B, H, W, C) -> rows (B*Ho*Wo, k*k*C), columns ordered (kh, kw, c)."""
    B, H, W, C = x.shape
    xp = jnp.pad(x, ((0, 0), (pad, pad), (pad, pad), (0, 0)))
    Ho = (H + 2 * pad - k) // stride + 1
    Wo = (W + 2 * pad - k) // stride + 1
    cols = []
    for kh in range(k):
        for kw in range(k):
            cols.append(xp[:, kh:kh + stride * Ho:stride,
                           kw:kw + stride * Wo:stride, :])
    cols = jnp.stack(cols, axis=3)                     # (B, Ho, Wo, k*k, C)
    return cols.reshape(B * Ho * Wo, k * k * C), Ho, Wo


# ----------------------------------------------------------------------------
# One-time parameter preprocessing: fold BN, transpose to NHWC ordering, pad N.
# Returns (arrays_pytree, static_meta).  static_meta holds only Python ints.
# ----------------------------------------------------------------------------
def prepare_params(p, data_shape, hidden_size, latent_size):
    def fold(w, b, gamma, beta, mean, var):
        cout, cin, k, _ = w.shape
        s = gamma / jnp.sqrt(var + BN_EPS)
        shift = s * (b - mean) + beta
        wn = jnp.transpose(w, (2, 3, 1, 0)).reshape(k * k * cin, cout)  # (kh,kw,cin) x cout
        wn = wn * s[None, :]                          # BN scale folded into weights
        npad = _round_up(cout, 128)
        wn = jnp.pad(wn, ((0, 0), (0, npad - cout))).astype(jnp.bfloat16)
        shift = jnp.pad(shift, (0, npad - cout)).reshape(1, npad).astype(jnp.float32)
        return wn, shift, int(cout)

    arrays = {"emb_w_t": p["emb_w"].T.astype(jnp.float32)}   # (num_mode, E)
    meta = {"conv_n": [], "res_n": None,
            "latent": int(latent_size)}

    convs = []
    for cp in p["convs"]:
        w, shift, n = fold(cp["w"], cp["b"], cp["gamma"], cp["beta"],
                           cp["mean"], cp["var"])
        convs.append(dict(w=w, shift=shift))
        meta["conv_n"].append(n)
    arrays["convs"] = convs

    resblocks = []
    for rb in p["resblocks"]:
        d = {}
        for j in (1, 2):
            w, shift, n = fold(rb[f"w{j}"], rb[f"b{j}"], rb[f"gamma{j}"],
                               rb[f"beta{j}"], rb[f"mean{j}"], rb[f"var{j}"])
            d[f"w{j}"], d[f"shift{j}"] = w, shift
        meta["res_n"] = n
        resblocks.append(d)
    arrays["resblocks"] = resblocks

    # Fused mu/logvar head, pre-permuted so it consumes NHWC-flattened features.
    C_last = int(hidden_size[-1])
    Hs = data_shape[1] // 2 ** len(hidden_size)
    Ws = data_shape[2] // 2 ** len(hidden_size)
    L = int(latent_size)

    def head_w_nhwc(w):  # torch weight (L, C*Hs*Ws) in CHW order -> (feat_nhwc, L)
        return jnp.transpose(w.reshape(L, C_last, Hs, Ws), (0, 2, 3, 1)).reshape(L, -1).T

    hw = jnp.concatenate([head_w_nhwc(p["mu_w"]), head_w_nhwc(p["lv_w"])], axis=1)
    hb = jnp.concatenate([p["mu_b"], p["lv_b"]])
    npad = _round_up(2 * L, 128)
    arrays["head_w"] = jnp.pad(hw, ((0, 0), (0, npad - 2 * L))).astype(jnp.bfloat16)
    arrays["head_shift"] = jnp.pad(hb, (0, npad - 2 * L)).reshape(1, npad).astype(jnp.float32)
    meta["c_last"] = C_last
    return arrays, meta


# ----------------------------------------------------------------------------
# Parameter construction (deterministic, synthetic)
# ----------------------------------------------------------------------------
def init_params(key, data_shape, hidden_size, latent_size, num_res_block,
                num_mode, embedding_size):
    keys = iter(jax.random.split(key, 128))
    nk = lambda: next(keys)
    p = {}
    p["emb_w"] = 0.3 * jax.random.normal(nk(), (embedding_size, num_mode), jnp.float32)

    convs = []
    in_ch = data_shape[0] + embedding_size
    for out_ch in hidden_size:
        convs.append(dict(
            w=jax.random.normal(nk(), (out_ch, in_ch, 4, 4), jnp.float32) / np.sqrt(in_ch * 16),
            b=0.1 * jax.random.normal(nk(), (out_ch,), jnp.float32),
            gamma=1.0 + 0.1 * jax.random.normal(nk(), (out_ch,), jnp.float32),
            beta=0.1 * jax.random.normal(nk(), (out_ch,), jnp.float32),
            mean=0.1 * jax.random.normal(nk(), (out_ch,), jnp.float32),
            var=0.9 + 0.1 * jnp.abs(jax.random.normal(nk(), (out_ch,), jnp.float32)),
        ))
        in_ch = out_ch
    p["convs"] = convs

    hs = hidden_size[-1]
    resblocks = []
    for _ in range(num_res_block):
        rb = {}
        for j in (1, 2):
            rb[f"w{j}"] = jax.random.normal(nk(), (hs, hs, 3, 3), jnp.float32) / np.sqrt(hs * 9)
            rb[f"b{j}"] = 0.1 * jax.random.normal(nk(), (hs,), jnp.float32)
            rb[f"gamma{j}"] = 1.0 + 0.1 * jax.random.normal(nk(), (hs,), jnp.float32)
            rb[f"beta{j}"] = 0.1 * jax.random.normal(nk(), (hs,), jnp.float32)
            rb[f"mean{j}"] = 0.1 * jax.random.normal(nk(), (hs,), jnp.float32)
            rb[f"var{j}"] = 0.9 + 0.1 * jnp.abs(jax.random.normal(nk(), (hs,), jnp.float32))
        resblocks.append(rb)
    p["resblocks"] = resblocks

    feat = hs * (data_shape[1] // 2 ** len(hidden_size)) * (data_shape[2] // 2 ** len(hidden_size))
    p["mu_w"] = jax.random.normal(nk(), (latent_size, feat), jnp.float32) / np.sqrt(feat)
    p["mu_b"] = 0.1 * jax.random.normal(nk(), (latent_size,), jnp.float32)
    p["lv_w"] = jax.random.normal(nk(), (latent_size, feat), jnp.float32) / np.sqrt(feat)
    p["lv_b"] = 0.1 * jax.random.normal(nk(), (latent_size,), jnp.float32)
    return p


# ----------------------------------------------------------------------------
# Encoder forward (Pallas).  `meta` is static (bound via functools.partial),
# `arrays` / x / indicator are traced.
# ----------------------------------------------------------------------------
def encoder_forward_pallas(arrays, x, indicator, *, meta):
    B, C, H, W = x.shape
    x_nhwc = jnp.transpose(x, (0, 2, 3, 1))                     # single relayout

    # embedding = nn.Linear(num_mode, E, bias=False)(indicator): trivially small,
    # plain JAX (indicator is one-hot -> exact row selection).
    emb = indicator.astype(jnp.float32) @ arrays["emb_w_t"]     # (B, E)
    E = emb.shape[1]
    emb_map = jnp.broadcast_to(emb[:, None, None, :], (B, H, W, E))
    h = jnp.concatenate([x_nhwc, emb_map], axis=-1)             # (B, H, W, C+E)

    # strided downsampling convs: Conv2d(k=4, s=2, p=1) + folded BN + ReLU
    y_pad = None
    for layer, n in zip(arrays["convs"], meta["conv_n"]):
        cols, Ho, Wo = im2col_nhwc(h, 4, 2, 1)
        y_pad = fused_matmul(cols, layer["w"], layer["shift"], relu=True,
                             out_dtype=jnp.bfloat16)            # (B*Ho*Wo, Npad)
        h = y_pad[:, :n].reshape(B, Ho, Wo, n)                  # NHWC, real channels

    # residual blocks: (conv3 BN ReLU conv3 BN) + input, ReLU
    n = meta["res_n"]
    for rb in arrays["resblocks"]:
        res_pad = y_pad                                         # padded lanes are exactly 0
        cols, Ho, Wo = im2col_nhwc(h, 3, 1, 1)
        y1 = fused_matmul(cols, rb["w1"], rb["shift1"], relu=True,
                          out_dtype=jnp.bfloat16)
        h1 = y1[:, :n].reshape(B, Ho, Wo, n)
        cols2, _, _ = im2col_nhwc(h1, 3, 1, 1)
        y_pad = fused_matmul(cols2, rb["w2"], rb["shift2"], residual=res_pad,
                             relu=True, out_dtype=jnp.bfloat16)  # fused add + ReLU
        h = y_pad[:, :n].reshape(B, Ho, Wo, n)

    # flatten (NHWC order; head weights were pre-permuted to match) and project
    # to the fused [mu | logvar] head in a single lane-dense pallas_call.
    flat = y_pad[:, :meta["c_last"]].reshape(B, -1)
    heads = fused_matmul(flat, arrays["head_w"], arrays["head_shift"], relu=False,
                         out_dtype=jnp.float32)                 # (B, Npad>=2L)
    L = meta["latent"]
    mu = heads[:, :L]
    logvar = heads[:, L:2 * L]
    z = mu  # eval mode: reparameterize (torch.randn_like) only applies in training
    return z, mu, logvar


# ----------------------------------------------------------------------------
# Plain-JAX (f32, highest precision) reference for verification
# ----------------------------------------------------------------------------
def ref_forward(p, x, indicator, eps=BN_EPS):
    prec = jax.lax.Precision.HIGHEST

    def conv(h, w, b, stride, pad):
        y = jax.lax.conv_general_dilated(
            h, w, (stride, stride), [(pad, pad), (pad, pad)],
            dimension_numbers=("NCHW", "OIHW", "NCHW"), precision=prec)
        return y + b[None, :, None, None]

    def bn(y, gamma, beta, mean, var):
        return (gamma[None, :, None, None] * (y - mean[None, :, None, None])
                / jnp.sqrt(var[None, :, None, None] + eps) + beta[None, :, None, None])

    B, C, H, W = x.shape
    emb = jnp.dot(indicator, p["emb_w"].T, precision=prec)
    emb_map = jnp.broadcast_to(emb[:, :, None, None], (B, emb.shape[1], H, W))
    h = jnp.concatenate([x, emb_map], axis=1)
    for cp in p["convs"]:
        h = jax.nn.relu(bn(conv(h, cp["w"], cp["b"], 2, 1),
                           cp["gamma"], cp["beta"], cp["mean"], cp["var"]))
    for rb in p["resblocks"]:
        inp = h
        y = jax.nn.relu(bn(conv(h, rb["w1"], rb["b1"], 1, 1),
                           rb["gamma1"], rb["beta1"], rb["mean1"], rb["var1"]))
        y = bn(conv(y, rb["w2"], rb["b2"], 1, 1),
               rb["gamma2"], rb["beta2"], rb["mean2"], rb["var2"])
        h = jax.nn.relu(y + inp)
    flat = h.reshape(B, -1)
    mu = jnp.dot(flat, p["mu_w"].T, precision=prec) + p["mu_b"]
    logvar = jnp.dot(flat, p["lv_w"].T, precision=prec) + p["lv_b"]
    return mu, mu, logvar


if __name__ == "__main__":
    # Small, module-consistent shapes
    data_shape = (4, 16, 16)      # (C, H, W)
    hidden_size = [8, 16]
    latent_size = 8
    num_res_block = 1
    num_mode = 4
    embedding_size = 4
    B = 2

    key = jax.random.PRNGKey(0)
    kp, kx, ki = jax.random.split(key, 3)
    params = init_params(kp, data_shape, hidden_size, latent_size,
                         num_res_block, num_mode, embedding_size)
    arrays, meta = prepare_params(params, data_shape, hidden_size, latent_size)

    x = jax.random.normal(kx, (B, *data_shape), jnp.float32)
    mode_idx = jax.random.randint(ki, (B,), 0, num_mode)
    indicator = jax.nn.one_hot(mode_idx, num_mode, dtype=jnp.float32)

    # `meta` (Python ints only) is bound statically; arrays/x/indicator traced.
    fwd = jax.jit(functools.partial(encoder_forward_pallas, meta=meta))
    z, mu, logvar = fwd(arrays, x, indicator)
    jax.block_until_ready((z, mu, logvar))

    # f32 reference check (Pallas path runs bf16 MXU operands with f32 accumulation).
    z_r, mu_r, lv_r = ref_forward(params, x, indicator)
    np.testing.assert_allclose(np.asarray(mu), np.asarray(mu_r), rtol=5e-2, atol=5e-2)
    np.testing.assert_allclose(np.asarray(logvar), np.asarray(lv_r), rtol=5e-2, atol=5e-2)
    np.testing.assert_allclose(np.asarray(z), np.asarray(z_r), rtol=5e-2, atol=5e-2)

    print("KERNEL_OK")
</pallas_src>

<mosaic_0001>
module attributes {stable_mosaic.version = 11 : i64} {
  func.func @_mm_kernel(%arg0: i32, %arg1: memref<128x128xbf16, #tpu.memory_space<vmem>>, %arg2: memref<128x128xbf16, #tpu.memory_space<vmem>>, %arg3: memref<1x128xf32, #tpu.memory_space<vmem>>, %arg4: memref<128x128xbf16, #tpu.memory_space<vmem>>) attributes {dimension_semantics = [#tpu.dimension_semantics<parallel>], iteration_bounds = array<i64: 1>, scalar_prefetch = 0 : i64, scratch_operands = 0 : i64, tpu.core_type = #tpu.core_type<tc>, window_params = [{transform_indices = @transform_0, window_bounds = array<i64: 128, 128>}, {pipeline_mode = #tpu.pipeline_mode<synchronous>, transform_indices = @transform_1, window_bounds = array<i64: 128, 128>}, {pipeline_mode = #tpu.pipeline_mode<synchronous>, transform_indices = @transform_2, window_bounds = array<i64: 1, 128>}, {transform_indices = @transform_3, window_bounds = array<i64: 128, 128>}]} {
    %c0 = arith.constant 0 : index
    %c0_0 = arith.constant 0 : index
    %0 = vector.load %arg1[%c0, %c0_0] : memref<128x128xbf16, #tpu.memory_space<vmem>>, vector<128x128xbf16>
    %c0_1 = arith.constant 0 : index
    %c0_2 = arith.constant 0 : index
    %1 = vector.load %arg2[%c0_1, %c0_2] : memref<128x128xbf16, #tpu.memory_space<vmem>>, vector<128x128xbf16>
    %cst = arith.constant dense<0.000000e+00> : vector<128x128xf32>
    %2 = tpu.matmul %0, %1, %cst {dimension_numbers = #tpu.dot_dimension_numbers<[1], [0], [0], [1], [0, 0, 1, 1], [], []>} : vector<128x128xbf16>, vector<128x128xbf16>, vector<128x128xf32> -> vector<128x128xf32>
    %c0_3 = arith.constant 0 : index
    %c0_4 = arith.constant 0 : index
    %3 = vector.load %arg3[%c0_3, %c0_4] : memref<1x128xf32, #tpu.memory_space<vmem>>, vector<1x128xf32>
    %4 = vector.broadcast %3 : vector<1x128xf32> to vector<128x128xf32>
    %5 = arith.addf %2, %4 : vector<128x128xf32>
    %cst_5 = arith.constant 0.000000e+00 : f32
    %6 = vector.broadcast %cst_5 : f32 to vector<128x128xf32>
    %7 = arith.maximumf %5, %6 : vector<128x128xf32>
    %8 = arith.truncf %7 : vector<128x128xf32> to vector<128x128xbf16>
    %c0_6 = arith.constant 0 : index
    %c0_7 = arith.constant 0 : index
    %9 = vector.load %arg4[%c0_6, %c0_7] : memref<128x128xbf16, #tpu.memory_space<vmem>>, vector<128x128xbf16>
    tpu.vector_store %arg4[%c0_6, %c0_7], %8 {strides = array<i32>} : memref<128x128xbf16, #tpu.memory_space<vmem>>, vector<128x128xbf16>,
    return
  }
  func.func @transform_0(%arg0: i32) -> (i32, i32) {
    %c0_i32 = arith.constant 0 : i32
    %c0_i32_0 = arith.constant 0 : i32
    return %arg0, %c0_i32 : i32, i32
  }
  func.func @transform_1(%arg0: i32) -> (i32, i32) {
    %c0_i32 = arith.constant 0 : i32
    %c0_i32_0 = arith.constant 0 : i32
    %c0_i32_1 = arith.constant 0 : i32
    return %c0_i32, %c0_i32_0 : i32, i32
  }
  func.func @transform_2(%arg0: i32) -> (i32, i32) {
    %c0_i32 = arith.constant 0 : i32
    %c0_i32_0 = arith.constant 0 : i32
    %c0_i32_1 = arith.constant 0 : i32
    return %c0_i32, %c0_i32_0 : i32, i32
  }
  func.func @transform_3(%arg0: i32) -> (i32, i32) {
    %c0_i32 = arith.constant 0 : i32
    %c0_i32_0 = arith.constant 0 : i32
    return %arg0, %c0_i32 : i32, i32
  }
}

module attributes {stable_mosaic.version = 11 : i64} {
  func.func @_mm_kernel(%arg0: i32, %arg1: memref<32x128xbf16, #tpu.memory_space<vmem>>, %arg2: memref<128x128xbf16, #tpu.memory_space<vmem>>, %arg3: memref<1x128xf32, #tpu.memory_space<vmem>>, %arg4: memref<32x128xbf16, #tpu.memory_space<vmem>>) attributes {dimension_semantics = [#tpu.dimension_semantics<parallel>], iteration_bounds = array<i64: 1>, scalar_prefetch = 0 : i64, scratch_operands = 0 : i64, tpu.core_type = #tpu.core_type<tc>, window_params = [{transform_indices = @transform_0, window_bounds = array<i64: 32, 128>}, {pipeline_mode = #tpu.pipeline_mode<synchronous>, transform_indices = @transform_1, window_bounds = array<i64: 128, 128>}, {pipeline_mode = #tpu.pipeline_mode<synchronous>, transform_indices = @transform_2, window_bounds = array<i64: 1, 128>}, {transform_indices = @transform_3, window_bounds = array<i64: 32, 128>}]} {
    %c0 = arith.constant 0 : index
    %c0_0 = arith.constant 0 : index
    %0 = vector.load %arg1[%c0, %c0_0] : memref<32x128xbf16, #tpu.memory_space<vmem>>, vector<32x128xbf16>
    %c0_1 = arith.constant 0 : index
    %c0_2 = arith.constant 0 : index
    %1 = vector.load %arg2[%c0_1, %c0_2] : memref<128x128xbf16, #tpu.memory_space<vmem>>, vector<128x128xbf16>
    %cst = arith.constant dense<0.000000e+00> : vector<32x128xf32>
    %2 = tpu.matmul %0, %1, %cst {dimension_numbers = #tpu.dot_dimension_numbers<[1], [0], [0], [1], [0, 0, 1, 1], [], []>} : vector<32x128xbf16>, vector<128x128xbf16>, vector<32x128xf32> -> vector<32x128xf32>
    %c0_3 = arith.constant 0 : index
    %c0_4 = arith.constant 0 : index
    %3 = vector.load %arg3[%c0_3, %c0_4] : memref<1x128xf32, #tpu.memory_space<vmem>>, vector<1x128xf32>
    %4 = vector.broadcast %3 : vector<1x128xf32> to vector<32x128xf32>
    %5 = arith.addf %2, %4 : vector<32x128xf32>
    %cst_5 = arith.constant 0.000000e+00 : f32
    %6 = vector.broadcast %cst_5 : f32 to vector<32x128xf32>
    %7 = arith.maximumf %5, %6 : vector<32x128xf32>
    %8 = arith.truncf %7 : vector<32x128xf32> to vector<32x128xbf16>
    %c0_6 = arith.constant 0 : index
    %c0_7 = arith.constant 0 : index
    %9 = vector.load %arg4[%c0_6, %c0_7] : memref<32x128xbf16, #tpu.memory_space<vmem>>, vector<32x128xbf16>
    tpu.vector_store %arg4[%c0_6, %c0_7], %8 {strides = array<i32>} : memref<32x128xbf16, #tpu.memory_space<vmem>>, vector<32x128xbf16>,
    return
  }
  func.func @transform_0(%arg0: i32) -> (i32, i32) {
    %c0_i32 = arith.constant 0 : i32
    %c0_i32_0 = arith.constant 0 : i32
    return %arg0, %c0_i32 : i32, i32
  }
  func.func @transform_1(%arg0: i32) -> (i32, i32) {
    %c0_i32 = arith.constant 0 : i32
    %c0_i32_0 = arith.constant 0 : i32
    %c0_i32_1 = arith.constant 0 : i32
    return %c0_i32, %c0_i32_0 : i32, i32
  }
  func.func @transform_2(%arg0: i32) -> (i32, i32) {
    %c0_i32 = arith.constant 0 : i32
    %c0_i32_0 = arith.constant 0 : i32
    %c0_i32_1 = arith.constant 0 : i32
    return %c0_i32, %c0_i32_0 : i32, i32
  }
  func.func @transform_3(%arg0: i32) -> (i32, i32) {
    %c0_i32 = arith.constant 0 : i32
    %c0_i32_0 = arith.constant 0 : i32
    return %arg0, %c0_i32 : i32, i32
  }
}

module attributes {stable_mosaic.version = 11 : i64} {
  func.func @_mm_kernel(%arg0: i32, %arg1: memref<32x144xbf16, #tpu.memory_space<vmem>>, %arg2: memref<144x128xbf16, #tpu.memory_space<vmem>>, %arg3: memref<1x128xf32, #tpu.memory_space<vmem>>, %arg4: memref<32x128xbf16, #tpu.memory_space<vmem>>) attributes {dimension_semantics = [#tpu.dimension_semantics<parallel>], iteration_bounds = array<i64: 1>, scalar_prefetch = 0 : i64, scratch_operands = 0 : i64, tpu.core_type = #tpu.core_type<tc>, window_params = [{transform_indices = @transform_0, window_bounds = array<i64: 32, 144>}, {pipeline_mode = #tpu.pipeline_mode<synchronous>, transform_indices = @transform_1, window_bounds = array<i64: 144, 128>}, {pipeline_mode = #tpu.pipeline_mode<synchronous>, transform_indices = @transform_2, window_bounds = array<i64: 1, 128>}, {transform_indices = @transform_3, window_bounds = array<i64: 32, 128>}]} {
    %c0 = arith.constant 0 : index
    %c0_0 = arith.constant 0 : index
    %0 = vector.load %arg1[%c0, %c0_0] : memref<32x144xbf16, #tpu.memory_space<vmem>>, vector<32x144xbf16>
    %c0_1 = arith.constant 0 : index
    %c0_2 = arith.constant 0 : index
    %1 = vector.load %arg2[%c0_1, %c0_2] : memref<144x128xbf16, #tpu.memory_space<vmem>>, vector<144x128xbf16>
    %cst = arith.constant dense<0.000000e+00> : vector<32x128xf32>
    %2 = tpu.matmul %0, %1, %cst {dimension_numbers = #tpu.dot_dimension_numbers<[1], [0], [0], [1], [0, 0, 1, 1], [], []>} : vector<32x144xbf16>, vector<144x128xbf16>, vector<32x128xf32> -> vector<32x128xf32>
    %c0_3 = arith.constant 0 : index
    %c0_4 = arith.constant 0 : index
    %3 = vector.load %arg3[%c0_3, %c0_4] : memref<1x128xf32, #tpu.memory_space<vmem>>, vector<1x128xf32>
    %4 = vector.broadcast %3 : vector<1x128xf32> to vector<32x128xf32>
    %5 = arith.addf %2, %4 : vector<32x128xf32>
    %cst_5 = arith.constant 0.000000e+00 : f32
    %6 = vector.broadcast %cst_5 : f32 to vector<32x128xf32>
    %7 = arith.maximumf %5, %6 : vector<32x128xf32>
    %8 = arith.truncf %7 : vector<32x128xf32> to vector<32x128xbf16>
    %c0_6 = arith.constant 0 : index
    %c0_7 = arith.constant 0 : index
    %9 = vector.load %arg4[%c0_6, %c0_7] : memref<32x128xbf16, #tpu.memory_space<vmem>>, vector<32x128xbf16>
    tpu.vector_store %arg4[%c0_6, %c0_7], %8 {strides = array<i32>} : memref<32x128xbf16, #tpu.memory_space<vmem>>, vector<32x128xbf16>,
    return
  }
  func.func @transform_0(%arg0: i32) -> (i32, i32) {
    %c0_i32 = arith.constant 0 : i32
    %c0_i32_0 = arith.constant 0 : i32
    return %arg0, %c0_i32 : i32, i32
  }
  func.func @transform_1(%arg0: i32) -> (i32, i32) {
    %c0_i32 = arith.constant 0 : i32
    %c0_i32_0 = arith.constant 0 : i32
    %c0_i32_1 = arith.constant 0 : i32
    return %c0_i32, %c0_i32_0 : i32, i32
  }
  func.func @transform_2(%arg0: i32) -> (i32, i32) {
    %c0_i32 = arith.constant 0 : i32
    %c0_i32_0 = arith.constant 0 : i32
    %c0_i32_1 = arith.constant 0 : i32
    return %c0_i32, %c0_i32_0 : i32, i32
  }
  func.func @transform_3(%arg0: i32) -> (i32, i32) {
    %c0_i32 = arith.constant 0 : i32
    %c0_i32_0 = arith.constant 0 : i32
    return %arg0, %c0_i32 : i32, i32
  }
}

module attributes {stable_mosaic.version = 11 : i64} {
  func.func @_mm_res_kernel(%arg0: i32, %arg1: memref<32x144xbf16, #tpu.memory_space<vmem>>, %arg2: memref<144x128xbf16, #tpu.memory_space<vmem>>, %arg3: memref<1x128xf32, #tpu.memory_space<vmem>>, %arg4: memref<32x128xbf16, #tpu.memory_space<vmem>>, %arg5: memref<32x128xbf16, #tpu.memory_space<vmem>>) attributes {dimension_semantics = [#tpu.dimension_semantics<parallel>], iteration_bounds = array<i64: 1>, scalar_prefetch = 0 : i64, scratch_operands = 0 : i64, tpu.core_type = #tpu.core_type<tc>, window_params = [{transform_indices = @transform_0, window_bounds = array<i64: 32, 144>}, {pipeline_mode = #tpu.pipeline_mode<synchronous>, transform_indices = @transform_1, window_bounds = array<i64: 144, 128>}, {pipeline_mode = #tpu.pipeline_mode<synchronous>, transform_indices = @transform_2, window_bounds = array<i64: 1, 128>}, {transform_indices = @transform_3, window_bounds = array<i64: 32, 128>}, {transform_indices = @transform_4, window_bounds = array<i64: 32, 128>}]} {
    %c0 = arith.constant 0 : index
    %c0_0 = arith.constant 0 : index
    %0 = vector.load %arg1[%c0, %c0_0] : memref<32x144xbf16, #tpu.memory_space<vmem>>, vector<32x144xbf16>
    %c0_1 = arith.constant 0 : index
    %c0_2 = arith.constant 0 : index
    %1 = vector.load %arg2[%c0_1, %c0_2] : memref<144x128xbf16, #tpu.memory_space<vmem>>, vector<144x128xbf16>
    %cst = arith.constant dense<0.000000e+00> : vector<32x128xf32>
    %2 = tpu.matmul %0, %1, %cst {dimension_numbers = #tpu.dot_dimension_numbers<[1], [0], [0], [1], [0, 0, 1, 1], [], []>} : vector<32x144xbf16>, vector<144x128xbf16>, vector<32x128xf32> -> vector<32x128xf32>
    %c0_3 = arith.constant 0 : index
    %c0_4 = arith.constant 0 : index
    %3 = vector.load %arg3[%c0_3, %c0_4] : memref<1x128xf32, #tpu.memory_space<vmem>>, vector<1x128xf32>
    %4 = vector.broadcast %3 : vector<1x128xf32> to vector<32x128xf32>
    %5 = arith.addf %2, %4 : vector<32x128xf32>
    %c0_5 = arith.constant 0 : index
    %c0_6 = arith.constant 0 : index
    %6 = vector.load %arg4[%c0_5, %c0_6] : memref<32x128xbf16, #tpu.memory_space<vmem>>, vector<32x128xbf16>
    %7 = arith.extf %6 : vector<32x128xbf16> to vector<32x128xf32>
    %8 = arith.addf %5, %7 : vector<32x128xf32>
    %cst_7 = arith.constant 0.000000e+00 : f32
    %9 = vector.broadcast %cst_7 : f32 to vector<32x128xf32>
    %10 = arith.maximumf %8, %9 : vector<32x128xf32>
    %11 = arith.truncf %10 : vector<32x128xf32> to vector<32x128xbf16>
    %c0_8 = arith.constant 0 : index
    %c0_9 = arith.constant 0 : index
    %12 = vector.load %arg5[%c0_8, %c0_9] : memref<32x128xbf16, #tpu.memory_space<vmem>>, vector<32x128xbf16>
    tpu.vector_store %arg5[%c0_8, %c0_9], %11 {strides = array<i32>} : memref<32x128xbf16, #tpu.memory_space<vmem>>, vector<32x128xbf16>,
    return
  }
  func.func @transform_0(%arg0: i32) -> (i32, i32) {
    %c0_i32 = arith.constant 0 : i32
    %c0_i32_0 = arith.constant 0 : i32
    return %arg0, %c0_i32 : i32, i32
  }
  func.func @transform_1(%arg0: i32) -> (i32, i32) {
    %c0_i32 = arith.constant 0 : i32
    %c0_i32_0 = arith.constant 0 : i32
    %c0_i32_1 = arith.constant 0 : i32
    return %c0_i32, %c0_i32_0 : i32, i32
  }
  func.func @transform_2(%arg0: i32) -> (i32, i32) {
    %c0_i32 = arith.constant 0 : i32
    %c0_i32_0 = arith.constant 0 : i32
    %c0_i32_1 = arith.constant 0 : i32
    return %c0_i32, %c0_i32_0 : i32, i32
  }
  func.func @transform_3(%arg0: i32) -> (i32, i32) {
    %c0_i32 = arith.constant 0 : i32
    %c0_i32_0 = arith.constant 0 : i32
    return %arg0, %c0_i32 : i32, i32
  }
  func.func @transform_4(%arg0: i32) -> (i32, i32) {
    %c0_i32 = arith.constant 0 : i32
    %c0_i32_0 = arith.constant 0 : i32
    return %arg0, %c0_i32 : i32, i32
  }
}

module attributes {stable_mosaic.version = 11 : i64} {
  func.func @_mm_kernel(%arg0: i32, %arg1: memref<8x256xbf16, #tpu.memory_space<vmem>>, %arg2: memref<256x128xbf16, #tpu.memory_space<vmem>>, %arg3: memref<1x128xf32, #tpu.memory_space<vmem>>, %arg4: memref<8x128xf32, #tpu.memory_space<vmem>>) attributes {dimension_semantics = [#tpu.dimension_semantics<parallel>], iteration_bounds = array<i64: 1>, scalar_prefetch = 0 : i64, scratch_operands = 0 : i64, tpu.core_type = #tpu.core_type<tc>, window_params = [{transform_indices = @transform_0, window_bounds = array<i64: 8, 256>}, {pipeline_mode = #tpu.pipeline_mode<synchronous>, transform_indices = @transform_1, window_bounds = array<i64: 256, 128>}, {pipeline_mode = #tpu.pipeline_mode<synchronous>, transform_indices = @transform_2, window_bounds = array<i64: 1, 128>}, {transform_indices = @transform_3, window_bounds = array<i64: 8, 128>}]} {
    %c0 = arith.constant 0 : index
    %c0_0 = arith.constant 0 : index
    %0 = vector.load %arg1[%c0, %c0_0] : memref<8x256xbf16, #tpu.memory_space<vmem>>, vector<8x256xbf16>
    %c0_1 = arith.constant 0 : index
    %c0_2 = arith.constant 0 : index
    %1 = vector.load %arg2[%c0_1, %c0_2] : memref<256x128xbf16, #tpu.memory_space<vmem>>, vector<256x128xbf16>
    %cst = arith.constant dense<0.000000e+00> : vector<8x128xf32>
    %2 = tpu.matmul %0, %1, %cst {dimension_numbers = #tpu.dot_dimension_numbers<[1], [0], [0], [1], [0, 0, 1, 1], [], []>} : vector<8x256xbf16>, vector<256x128xbf16>, vector<8x128xf32> -> vector<8x128xf32>
    %c0_3 = arith.constant 0 : index
    %c0_4 = arith.constant 0 : index
    %3 = vector.load %arg3[%c0_3, %c0_4] : memref<1x128xf32, #tpu.memory_space<vmem>>, vector<1x128xf32>
    %4 = vector.broadcast %3 : vector<1x128xf32> to vector<8x128xf32>
    %5 = arith.addf %2, %4 : vector<8x128xf32>
    %c0_5 = arith.constant 0 : index
    %c0_6 = arith.constant 0 : index
    %6 = vector.load %arg4[%c0_5, %c0_6] : memref<8x128xf32, #tpu.memory_space<vmem>>, vector<8x128xf32>
    tpu.vector_store %arg4[%c0_5, %c0_6], %5 {strides = array<i32>} : memref<8x128xf32, #tpu.memory_space<vmem>>, vector<8x128xf32>,
    return
  }
  func.func @transform_0(%arg0: i32) -> (i32, i32) {
    %c0_i32 = arith.constant 0 : i32
    %c0_i32_0 = arith.constant 0 : i32
    return %arg0, %c0_i32 : i32, i32
  }
  func.func @transform_1(%arg0: i32) -> (i32, i32) {
    %c0_i32 = arith.constant 0 : i32
    %c0_i32_0 = arith.constant 0 : i32
    %c0_i32_1 = arith.constant 0 : i32
    return %c0_i32, %c0_i32_0 : i32, i32
  }
  func.func @transform_2(%arg0: i32) -> (i32, i32) {
    %c0_i32 = arith.constant 0 : i32
    %c0_i32_0 = arith.constant 0 : i32
    %c0_i32_1 = arith.constant 0 : i32
    return %c0_i32, %c0_i32_0 : i32, i32
  }
  func.func @transform_3(%arg0: i32) -> (i32, i32) {
    %c0_i32 = arith.constant 0 : i32
    %c0_i32_0 = arith.constant 0 : i32
    return %arg0, %c0_i32 : i32, i32
  }
}

</mosaic_0001>

<bundles_post_ra>
// kernel: encoder_forward_pallas.5
= control target key start
LH: loop header
LB: loop body
LE: loop exit
PB: predicated region body
PF: predicated region fallthrough
CT: control target
= control target key end

     0   :  { %s494_s1 = inlined_call_operand.vmem [shape: bf16[128,128], index: 1, kind: input, shape index: {}]   ;;  %s495_s2 = inlined_call_operand.vmem [shape: f32[1,128], index: 2, kind: input, shape index: {}]   ;;  %s496_s0 = inlined_call_operand.vmem [shape: bf16[128,128], index: 0, kind: input, shape index: {}]   ;;  %s497_s3 = inlined_call_operand.vmem [shape: bf16[128,128], index: 3, kind: output, shape index: {}]  }
   0x1   :  { %v326_v0 = vld [vmem:[%s494_s1 + $0x38] sm:$0xff]  ;;  %v325_v1 = vld [vmem:[%s494_s1 + $0x30] sm:$0xff]  ;;  %v324_v2 = vld [vmem:[%s494_s1 + $0x28] sm:$0xff] }
   0x2   :  { %146 = vmatpush.bf16.msra.mxu0 %v326_v0  ;;  %374 = vmatpush.bf16.msra.mxu1 %v326_v0  ;;  %v323_v3 = vld [vmem:[%s494_s1 + $0x20] sm:$0xff]  ;;  %v322_v4 = vld [vmem:[%s494_s1 + $0x18] sm:$0xff]  ;;  %v321_v5 = vld [vmem:[%s494_s1 + $0x10] sm:$0xff] }
   0x3   :  { %375 = vmatpush.bf16.msra.mxu2 %v326_v0  ;;  %376 = vmatpush.bf16.msra.mxu3 %v326_v0  ;;  %v320_v6 = vld [vmem:[%s494_s1 + $0x8] sm:$0xff]  ;;  %v319_v7 = vld [vmem:[%s494_s1] sm:$0xff]  ;;  %v313_v9 = vld [vmem:[%s496_s0 + $0x10] sm:$0xff] }
   0x4   :  { %v311_v8 = vld [vmem:[%s496_s0] sm:$0xff]  ;;  %v317_v11 = vld [vmem:[%s496_s0 + $0x30] sm:$0xff]  ;;  %v312_v12 = vld [vmem:[%s496_s0 + $0x8] sm:$0xff] }
   0x5   :  { %v315_v10 = vld [vmem:[%s496_s0 + $0x20] sm:$0xff]  ;;  %v314_v13 = vld [vmem:[%s496_s0 + $0x18] sm:$0xff]  ;;  %v316_v14 = vld [vmem:[%s496_s0 + $0x28] sm:$0xff] }
   0x6   :  { %147 = vmatpush.bf16.msra.mxu0 %v325_v1  ;;  %377 = vmatpush.bf16.msra.mxu1 %v325_v1  ;;  %v318_v15 = vld [vmem:[%s496_s0 + $0x38] sm:$0xff]  ;;  %v398_v18 = vld [vmem:[%s495_s2] ss:$0 sm:$0xff] }
   0x7   :  { %378 = vmatpush.bf16.msra.mxu2 %v325_v1  ;;  %379 = vmatpush.bf16.msra.mxu3 %v325_v1 }
   0xa   :  { %148 = vmatpush.bf16.msra.mxu0 %v324_v2  ;;  %380 = vmatpush.bf16.msra.mxu1 %v324_v2 }
   0xb   :  { %381 = vmatpush.bf16.msra.mxu2 %v324_v2  ;;  %382 = vmatpush.bf16.msra.mxu3 %v324_v2 }
   0xe   :  { %149 = vmatpush.bf16.msra.mxu0 %v323_v3  ;;  %383 = vmatpush.bf16.msra.mxu1 %v323_v3 }
   0xf   :  { %384 = vmatpush.bf16.msra.mxu2 %v323_v3  ;;  %385 = vmatpush.bf16.msra.mxu3 %v323_v3 }
  0x12   :  { %150 = vmatpush.bf16.msra.mxu0 %v322_v4  ;;  %386 = vmatpush.bf16.msra.mxu1 %v322_v4 }
  0x13   :  { %387 = vmatpush.bf16.msra.mxu2 %v322_v4  ;;  %388 = vmatpush.bf16.msra.mxu3 %v322_v4 }
  0x16   :  { %151 = vmatpush.bf16.msra.mxu0 %v321_v5  ;;  %389 = vmatpush.bf16.msra.mxu1 %v321_v5 }
  0x17   :  { %390 = vmatpush.bf16.msra.mxu2 %v321_v5  ;;  %391 = vmatpush.bf16.msra.mxu3 %v321_v5 }
  0x1a   :  { %152 = vmatpush.bf16.msra.mxu0 %v320_v6  ;;  %392 = vmatpush.bf16.msra.mxu1 %v320_v6 }
  0x1b   :  { %393 = vmatpush.bf16.msra.mxu2 %v320_v6  ;;  %394 = vmatpush.bf16.msra.mxu3 %v320_v6 }
  0x1e   :  { %153 = vmatpush.bf16.msra.mxu0 %v319_v7  ;;  %395 = vmatpush.bf16.msra.mxu1 %v319_v7 }
  0x1f   :  { %396 = vmatpush.bf16.msra.mxu2 %v319_v7  ;;  %397 = vmatpush.bf16.msra.mxu3 %v319_v7 }
  0x21   :  { %154 = vmatmul.bf16.vlgmr.msra.gmra.mxu0 %v311_v8  ;;  %164 = vmatmul.bf16.vlgmr.msra.gmra.mxu1 %v313_v9 }
  0x22   :  { %174 = vmatmul.bf16.vlgmr.msra.gmra.mxu2 %v315_v10  ;;  %184 = vmatmul.bf16.vlgmr.msra.gmra.mxu3 %v317_v11 }
  0x31   :  { %159 = vmatmul.bf16.gmra.mxu0 %v312_v12  ;;  %169 = vmatmul.bf16.gmra.mxu1 %v314_v13 }
  0x32   :  { %179 = vmatmul.bf16.gmra.mxu2 %v316_v14  ;;  %189 = vmatmul.bf16.gmra.mxu3 %v318_v15 }
  0x9e   :  { %v155_v16 = vpop.f32.mrf.mxu0  ;;  %v165_v17 = vpop.f32.mrf.mxu1 }
  0x9f   :  { %v156_v19 = vadd.f32 %v398_v18, %v155_v16  ;;  %v166_v20 = vadd.f32 %v398_v18, %v165_v17 }
  0xa1   :  { %v195_v27 = vmax.f32 %v156_v19, 0.0  ;;  %v199_v28 = vmax.f32 %v166_v20, 0.0 }
  0xa5   :  { %v175_v21 = vpop.f32.mrf.mxu2  ;;  %v185_v22 = vpop.f32.mrf.mxu3 }
  0xa6   :  { %v157_v23 = vpop.f32.mrf.mxu0  ;;  %v167_v24 = vpop.f32.mrf.mxu1  ;;  %v176_v33 = vadd.f32 %v398_v18, %v175_v21  ;;  %v186_v34 = vadd.f32 %v398_v18, %v185_v22 }
  0xa7   :  { %v158_v25 = vadd.f32 %v398_v18, %v157_v23  ;;  %v168_v26 = vadd.f32 %v398_v18, %v167_v24 }
  0xa8   :  { %v203_v41 = vmax.f32 %v176_v33, 0.0  ;;  %v207_v42 = vmax.f32 %v186_v34, 0.0 }
  0xa9   :  { %v196_v29 = vmax.f32 %v158_v25, 0.0  ;;  %v200_v30 = vmax.f32 %v168_v26, 0.0 }
  0xab   :  { %v330_v31 = vpack.c.bf16 %v196_v29, %v195_v27  ;;  %v340_v32 = vpack.c.bf16 %v200_v30, %v199_v28 }
  0xad   :  { %331 = vst [vmem:[%s497_s3] sm:$0xff] %v330_v31   ;;  %v177_v35 = vpop.f32.mrf.mxu2  ;;  %v187_v36 = vpop.f32.mrf.mxu3 }
  0xae   :  { %368 = vst [vmem:[%s497_s3 + $0x10] sm:$0xff] %v340_v32   ;;  %v178_v37 = vadd.f32 %v398_v18, %v177_v35  ;;  %v188_v38 = vadd.f32 %v398_v18, %v187_v36  ;;  %v160_v39 = vpop.f32.mrf.mxu0  ;;  %v170_v40 = vpop.f32.mrf.mxu1 }
  0xaf   :  { %v161_v47 = vadd.f32 %v398_v18, %v160_v39  ;;  %v171_v48 = vadd.f32 %v398_v18, %v170_v40 }
  0xb0   :  { %v204_v43 = vmax.f32 %v178_v37, 0.0  ;;  %v208_v44 = vmax.f32 %v188_v38, 0.0 }
  0xb1   :  { %v197_v55 = vmax.f32 %v161_v47, 0.0  ;;  %v201_v56 = vmax.f32 %v171_v48, 0.0 }
  0xb2   :  { %v350_v45 = vpack.c.bf16 %v204_v43, %v203_v41  ;;  %v360_v46 = vpack.c.bf16 %v208_v44, %v207_v42 }
  0xb4   :  { %370 = vst [vmem:[%s497_s3 + $0x20] sm:$0xff] %v350_v45  }
  0xb5   :  { %372 = vst [vmem:[%s497_s3 + $0x30] sm:$0xff] %v360_v46   ;;  %v180_v49 = vpop.f32.mrf.mxu2  ;;  %v190_v50 = vpop.f32.mrf.mxu3 }
  0xb6   :  { %v162_v51 = vpop.f32.mrf.mxu0  ;;  %v172_v52 = vpop.f32.mrf.mxu1  ;;  %v181_v61 = vadd.f32 %v398_v18, %v180_v49  ;;  %v191_v62 = vadd.f32 %v398_v18, %v190_v50 }
  0xb7   :  { %v163_v53 = vadd.f32 %v398_v18, %v162_v51  ;;  %v173_v54 = vadd.f32 %v398_v18, %v172_v52 }
  0xb8   :  { %v205_v3 = vmax.f32 %v181_v61, 0.0  ;;  %v209_v4 = vmax.f32 %v191_v62, 0.0 }
  0xb9   :  { %v198_v57 = vmax.f32 %v163_v53, 0.0  ;;  %v202_v58 = vmax.f32 %v173_v54, 0.0 }
  0xbb   :  { %v335_v59 = vpack.c.bf16 %v198_v57, %v197_v55  ;;  %v345_v60 = vpack.c.bf16 %v202_v58, %v201_v56 }
  0xbd   :  { %367 = vst [vmem:[%s497_s3 + $0x8] sm:$0xff] %v335_v59   ;;  %v182_v63 = vpop.f32.mrf.mxu2  ;;  %v192_v0 = vpop.f32.mrf.mxu3 }
  0xbe   :  { %369 = vst [vmem:[%s497_s3 + $0x18] sm:$0xff] %v345_v60   ;;  %v183_v1 = vadd.f32 %v398_v18, %v182_v63  ;;  %v193_v2 = vadd.f32 %v398_v18, %v192_v0 }
  0xc0   :  { %v206_v5 = vmax.f32 %v183_v1, 0.0  ;;  %v210_v6 = vmax.f32 %v193_v2, 0.0 }
  0xc2   :  { %v355_v7 = vpack.c.bf16 %v206_v5, %v205_v3  ;;  %v365_v8 = vpack.c.bf16 %v210_v6, %v209_v4 }
  0xc4   :  { %371 = vst [vmem:[%s497_s3 + $0x28] sm:$0xff] %v355_v7  }
  0xc5   :  { %373 = vst [vmem:[%s497_s3 + $0x38] sm:$0xff] %v365_v8  }

// kernel: encoder_forward_pallas.6
= control target key start
LH: loop header
LB: loop body
LE: loop exit
PB: predicated region body
PF: predicated region fallthrough
CT: control target
= control target key end

     0   :  { %s262_s1 = inlined_call_operand.vmem [shape: bf16[128,128], index: 1, kind: input, shape index: {}]   ;;  %s263_s2 = inlined_call_operand.vmem [shape: f32[1,128], index: 2, kind: input, shape index: {}]   ;;  %s264_s0 = inlined_call_operand.vmem [shape: bf16[32,128], index: 0, kind: input, shape index: {}]   ;;  %s265_s3 = inlined_call_operand.vmem [shape: bf16[32,128], index: 3, kind: output, shape index: {}]  }
   0x1   :  { %v182_v0 = vld [vmem:[%s262_s1 + $0x38] sm:$0xff]  ;;  %v181_v1 = vld [vmem:[%s262_s1 + $0x30] sm:$0xff]  ;;  %v180_v2 = vld [vmem:[%s262_s1 + $0x28] sm:$0xff] }
   0x2   :  { %98 = vmatpush.bf16.msra.mxu0 %v182_v0  ;;  %194 = vmatpush.bf16.msra.mxu1 %v182_v0  ;;  %v179_v3 = vld [vmem:[%s262_s1 + $0x20] sm:$0xff]  ;;  %v178_v4 = vld [vmem:[%s262_s1 + $0x18] sm:$0xff]  ;;  %v177_v5 = vld [vmem:[%s262_s1 + $0x10] sm:$0xff] }
   0x3   :  { %v176_v6 = vld [vmem:[%s262_s1 + $0x8] sm:$0xff]  ;;  %v175_v7 = vld [vmem:[%s262_s1] sm:$0xff] }
   0x4   :  { %v173_v8 = vld [vmem:[%s264_s0] sm:$0xff]  ;;  %v174_v9 = vld [vmem:[%s264_s0 + $0x8] sm:$0xff] }
   0x5   :  { %v202_v12 = vld [vmem:[%s263_s2] ss:$0 sm:$0xff] }
   0x6   :  { %99 = vmatpush.bf16.msra.mxu0 %v181_v1  ;;  %195 = vmatpush.bf16.msra.mxu1 %v181_v1 }
   0xa   :  { %100 = vmatpush.bf16.msra.mxu0 %v180_v2  ;;  %196 = vmatpush.bf16.msra.mxu1 %v180_v2 }
   0xe   :  { %101 = vmatpush.bf16.msra.mxu0 %v179_v3  ;;  %197 = vmatpush.bf16.msra.mxu1 %v179_v3 }
  0x12   :  { %102 = vmatpush.bf16.msra.mxu0 %v178_v4  ;;  %198 = vmatpush.bf16.msra.mxu1 %v178_v4 }
  0x16   :  { %103 = vmatpush.bf16.msra.mxu0 %v177_v5  ;;  %199 = vmatpush.bf16.msra.mxu1 %v177_v5 }
  0x1a   :  { %104 = vmatpush.bf16.msra.mxu0 %v176_v6  ;;  %200 = vmatpush.bf16.msra.mxu1 %v176_v6 }
  0x1e   :  { %105 = vmatpush.bf16.msra.mxu0 %v175_v7  ;;  %201 = vmatpush.bf16.msra.mxu1 %v175_v7 }
  0x21   :  { %106 = vmatmul.bf16.vlgmr.msra.gmra.mxu0 %v173_v8  ;;  %111 = vmatmul.bf16.vlgmr.msra.gmra.mxu1 %v174_v9 }
  0x9e   :  { %v107_v10 = vpop.f32.mrf.mxu0  ;;  %v112_v11 = vpop.f32.mrf.mxu1 }
  0x9f   :  { %v108_v13 = vadd.f32 %v202_v12, %v107_v10  ;;  %v113_v14 = vadd.f32 %v202_v12, %v112_v11 }
  0xa1   :  { %v117_v19 = vmax.f32 %v108_v13, 0.0  ;;  %v119_v20 = vmax.f32 %v113_v14, 0.0 }
  0xa6   :  { %v109_v15 = vpop.f32.mrf.mxu0  ;;  %v114_v16 = vpop.f32.mrf.mxu1 }
  0xa7   :  { %v110_v17 = vadd.f32 %v202_v12, %v109_v15  ;;  %v115_v18 = vadd.f32 %v202_v12, %v114_v16 }
  0xa9   :  { %v118_v21 = vmax.f32 %v110_v17, 0.0  ;;  %v120_v22 = vmax.f32 %v115_v18, 0.0 }
  0xab   :  { %v186_v23 = vpack.c.bf16 %v118_v21, %v117_v19  ;;  %v191_v24 = vpack.c.bf16 %v120_v22, %v119_v20 }
  0xad   :  { %187 = vst [vmem:[%s265_s3] sm:$0xff] %v186_v23  }
  0xae   :  { %193 = vst [vmem:[%s265_s3 + $0x8] sm:$0xff] %v191_v24  }

// kernel: encoder_forward_pallas.7
= control target key start
LH: loop header
LB: loop body
LE: loop exit
PB: predicated region body
PF: predicated region fallthrough
CT: control target
= control target key end

     0   :  { %vm113_vm0 = vcmask 130048   ;;  %s343_s1 = inlined_call_operand.vmem [shape: bf16[144,128], index: 1, kind: input, shape index: {}]   ;;  %s344_s0 = inlined_call_operand.vmem [shape: bf16[32,144], index: 0, kind: input, shape index: {}]   ;;  %s345_s2 = inlined_call_operand.vmem [shape: f32[1,128], index: 2, kind: input, shape index: {}]   ;;  %s346_s3 = inlined_call_operand.vmem [shape: bf16[32,128], index: 3, kind: output, shape index: {}]  }
   0x1   :  { %v239_v0 = vld [vmem:[%s343_s1 + $0x38] sm:$0xff]  ;;  %v240_v1 = vld [vmem:[%s343_s1 + $0x40] sm:$0xff]  ;;  %v238_v3 = vld [vmem:[%s343_s1 + $0x30] sm:$0xff] }
   0x2   :  { %v228_v2 = vld [vmem:[%s344_s0 + $0x4] sm:$0xf]  ;;  %120 = vmatpush.bf16.msra.mxu0 %v239_v0  ;;  %252 = vmatpush.bf16.msra.mxu2 %v239_v0  ;;  %v178_v4 = vld [vmem:[%s344_s0 + $0x8] sm:$0xf0]  ;;  %v235_v8 = vld [vmem:[%s343_s1 + $0x18] sm:$0xff] }
   0x3   :  { %146 = vmatpush.bf16.msra.mxu1 %v240_v1  ;;  %v181_v5 = vor.u32 %v228_v2, %v178_v4  ;;  %v237_v6 = vld [vmem:[%s343_s1 + $0x28] sm:$0xff]  ;;  %v236_v7 = vld [vmem:[%s343_s1 + $0x20] sm:$0xff]  ;;  %v230_v9 = vld [vmem:[%s344_s0 + $0x14] sm:$0xf] }
   0x4   :  { %v186_v10 = vld [vmem:[%s344_s0 + $0x18] sm:$0xf0]  ;;  %v234_v11 = vld [vmem:[%s343_s1 + $0x10] sm:$0xff]  ;;  %v233_v13 = vld [vmem:[%s343_s1 + $0x8] sm:$0xff] }
   0x5   :  { %v189_v12 = vor.u32 %v230_v9, %v186_v10  ;;  %v232_v14 = vld [vmem:[%s343_s1] sm:$0xff]  ;;  %v229_v16 = vld [vmem:[%s344_s0 + $0x4] sm:$0xf0]  ;;  %v184_v17 = vld [vmem:[%s344_s0 + $0x10] sm:$0xf] }
   0x6   :  { %121 = vmatpush.bf16.msra.mxu0 %v238_v3  ;;  %253 = vmatpush.bf16.msra.mxu2 %v238_v3  ;;  %v176_v15 = vld [vmem:[%s344_s0] sm:$0xf]  ;;  %v231_v18 = vld [vmem:[%s344_s0 + $0x14] sm:$0xf0] }
   0x7   :  { %226 = vmatmul.msk.bf16.vlgmr.msra.gmra.mxu1 %vm113_vm0, %v181_v5  ;;  %v177_v19 = vor.u32 %v229_v16, %v176_v15  ;;  %v185_v20 = vor.u32 %v231_v18, %v184_v17  ;;  %v260_v24 = vld [vmem:[%s345_s2] ss:$0 sm:$0xff] }
   0xa   :  { %122 = vmatpush.bf16.msra.mxu0 %v237_v6  ;;  %254 = vmatpush.bf16.msra.mxu2 %v237_v6 }
   0xe   :  { %123 = vmatpush.bf16.msra.mxu0 %v236_v7  ;;  %255 = vmatpush.bf16.msra.mxu2 %v236_v7 }
  0x12   :  { %124 = vmatpush.bf16.msra.mxu0 %v235_v8  ;;  %256 = vmatpush.bf16.msra.mxu2 %v235_v8 }
  0x16   :  { %125 = vmatpush.bf16.msra.mxu0 %v234_v11  ;;  %257 = vmatpush.bf16.msra.mxu2 %v234_v11 }
  0x17   :  { %227 = vmatmul.msk.bf16.gmra.mxu1 %vm113_vm0, %v189_v12 }
  0x1a   :  { %126 = vmatpush.bf16.msra.mxu0 %v233_v13  ;;  %258 = vmatpush.bf16.msra.mxu2 %v233_v13 }
  0x1e   :  { %127 = vmatpush.bf16.msra.mxu0 %v232_v14  ;;  %259 = vmatpush.bf16.msra.mxu2 %v232_v14 }
  0x21   :  { %128 = vmatmul.bf16.vlgmr.msra.gmra.mxu0 %v177_v19  ;;  %133 = vmatmul.bf16.vlgmr.msra.gmra.mxu2 %v185_v20 }
  0x84   :  { %v148_v21 = vpop.f32.mrf.mxu1 }
  0x8c   :  { %v150_v22 = vpop.f32.mrf.mxu1 }
  0x94   :  { %v153_v26 = vpop.f32.mrf.mxu1 }
  0x9c   :  { %v155_v39 = vpop.f32.mrf.mxu1 }
  0x9e   :  { %v129_v23 = vpop.f32.mrf.mxu0 }
  0x9f   :  { %v130_v25 = vadd.f32 %v260_v24, %v129_v23 }
  0xa1   :  { %v149_v29 = vadd.f32 %v148_v21, %v130_v25 }
  0xa3   :  { %v158_v33 = vmax.f32 %v149_v29, 0.0 }
  0xa4   :  { %v134_v27 = vpop.f32.mrf.mxu2 }
  0xa5   :  { %v135_v31 = vadd.f32 %v260_v24, %v134_v27 }
  0xa6   :  { %v131_v28 = vpop.f32.mrf.mxu0 }
  0xa7   :  { %v132_v30 = vadd.f32 %v260_v24, %v131_v28  ;;  %v154_v36 = vadd.f32 %v153_v26, %v135_v31 }
  0xa9   :  { %v151_v32 = vadd.f32 %v150_v22, %v132_v30  ;;  %v160_v41 = vmax.f32 %v154_v36, 0.0 }
  0xab   :  { %v159_v34 = vmax.f32 %v151_v32, 0.0 }
  0xac   :  { %v136_v35 = vpop.f32.mrf.mxu2 }
  0xad   :  { %v244_v37 = vpack.c.bf16 %v159_v34, %v158_v33  ;;  %v137_v38 = vadd.f32 %v260_v24, %v136_v35 }
  0xaf   :  { %245 = vst [vmem:[%s346_s3] sm:$0xff] %v244_v37   ;;  %v156_v40 = vadd.f32 %v155_v39, %v137_v38 }
  0xb1   :  { %v161_v42 = vmax.f32 %v156_v40, 0.0 }
  0xb3   :  { %v249_v43 = vpack.c.bf16 %v161_v42, %v160_v41 }
  0xb5   :  { %251 = vst [vmem:[%s346_s3 + $0x8] sm:$0xff] %v249_v43  }

// kernel: encoder_forward_pallas.8
= control target key start
LH: loop header
LB: loop body
LE: loop exit
PB: predicated region body
PF: predicated region fallthrough
CT: control target
= control target key end

     0   :  { %vm116_vm0 = vcmask 130048   ;;  %s378_s1 = inlined_call_operand.vmem [shape: bf16[144,128], index: 1, kind: input, shape index: {}]   ;;  %s379_s0 = inlined_call_operand.vmem [shape: bf16[32,144], index: 0, kind: input, shape index: {}]   ;;  %s380_s2 = inlined_call_operand.vmem [shape: f32[1,128], index: 2, kind: input, shape index: {}]   ;;  %s381_s3 = inlined_call_operand.vmem [shape: bf16[32,128], index: 3, kind: input, shape index: {}]   ;;  %s382_s4 = inlined_call_operand.vmem [shape: bf16[32,128], index: 4, kind: output, shape index: {}]  }
   0x1   :  { %v254_v0 = vld [vmem:[%s378_s1 + $0x38] sm:$0xff]  ;;  %v255_v1 = vld [vmem:[%s378_s1 + $0x40] sm:$0xff]  ;;  %v253_v3 = vld [vmem:[%s378_s1 + $0x30] sm:$0xff] }
   0x2   :  { %v243_v2 = vld [vmem:[%s379_s0 + $0x4] sm:$0xf]  ;;  %123 = vmatpush.bf16.msra.mxu0 %v254_v0  ;;  %276 = vmatpush.bf16.msra.mxu2 %v254_v0  ;;  %v193_v4 = vld [vmem:[%s379_s0 + $0x8] sm:$0xf0]  ;;  %v250_v8 = vld [vmem:[%s378_s1 + $0x18] sm:$0xff] }
   0x3   :  { %149 = vmatpush.bf16.msra.mxu1 %v255_v1  ;;  %v196_v5 = vor.u32 %v243_v2, %v193_v4  ;;  %v252_v6 = vld [vmem:[%s378_s1 + $0x28] sm:$0xff]  ;;  %v251_v7 = vld [vmem:[%s378_s1 + $0x20] sm:$0xff]  ;;  %v245_v9 = vld [vmem:[%s379_s0 + $0x14] sm:$0xf] }
   0x4   :  { %v201_v10 = vld [vmem:[%s379_s0 + $0x18] sm:$0xf0]  ;;  %v249_v11 = vld [vmem:[%s378_s1 + $0x10] sm:$0xff]  ;;  %v248_v13 = vld [vmem:[%s378_s1 + $0x8] sm:$0xff] }
   0x5   :  { %v204_v12 = vor.u32 %v245_v9, %v201_v10  ;;  %v247_v14 = vld [vmem:[%s378_s1] sm:$0xff]  ;;  %v244_v16 = vld [vmem:[%s379_s0 + $0x4] sm:$0xf0]  ;;  %v199_v17 = vld [vmem:[%s379_s0 + $0x10] sm:$0xf] }
   0x6   :  { %124 = vmatpush.bf16.msra.mxu0 %v253_v3  ;;  %277 = vmatpush.bf16.msra.mxu2 %v253_v3  ;;  %v191_v15 = vld [vmem:[%s379_s0] sm:$0xf]  ;;  %v246_v18 = vld [vmem:[%s379_s0 + $0x14] sm:$0xf0]  ;;  %v274_v35 = vld [vmem:[%s381_s3 + $0x8] sm:$0xff]  }
   0x7   :  { %241 = vmatmul.msk.bf16.vlgmr.msra.gmra.mxu1 %vm116_vm0, %v196_v5  ;;  %v192_v19 = vor.u32 %v244_v16, %v191_v15  ;;  %v200_v20 = vor.u32 %v246_v18, %v199_v17  ;;  %v284_v23 = vld [vmem:[%s380_s2] ss:$0 sm:$0xff]  ;;  %v262_v39 = vunpack.c.l.bf16 %v274_v35  ;;  %v263_v45 = vunpack.c.h.bf16 %v274_v35 }
   0x8   :  { %v257_v26 = vld [vmem:[%s381_s3] sm:$0xff]  }
   0x9   :  { %v258_v30 = vunpack.c.l.bf16 %v257_v26  ;;  %v259_v34 = vunpack.c.h.bf16 %v257_v26 }
   0xa   :  { %125 = vmatpush.bf16.msra.mxu0 %v252_v6  ;;  %278 = vmatpush.bf16.msra.mxu2 %v252_v6 }
   0xe   :  { %126 = vmatpush.bf16.msra.mxu0 %v251_v7  ;;  %279 = vmatpush.bf16.msra.mxu2 %v251_v7 }
  0x12   :  { %127 = vmatpush.bf16.msra.mxu0 %v250_v8  ;;  %280 = vmatpush.bf16.msra.mxu2 %v250_v8 }
  0x16   :  { %128 = vmatpush.bf16.msra.mxu0 %v249_v11  ;;  %281 = vmatpush.bf16.msra.mxu2 %v249_v11 }
  0x17   :  { %242 = vmatmul.msk.bf16.gmra.mxu1 %vm116_vm0, %v204_v12 }
  0x1a   :  { %129 = vmatpush.bf16.msra.mxu0 %v248_v13  ;;  %282 = vmatpush.bf16.msra.mxu2 %v248_v13 }
  0x1e   :  { %130 = vmatpush.bf16.msra.mxu0 %v247_v14  ;;  %283 = vmatpush.bf16.msra.mxu2 %v247_v14 }
  0x21   :  { %131 = vmatmul.bf16.vlgmr.msra.gmra.mxu0 %v192_v19  ;;  %136 = vmatmul.bf16.vlgmr.msra.gmra.mxu2 %v200_v20 }
  0x84   :  { %v151_v21 = vpop.f32.mrf.mxu1 }
  0x8c   :  { %v153_v22 = vpop.f32.mrf.mxu1 }
  0x94   :  { %v156_v27 = vpop.f32.mrf.mxu1 }
  0x9c   :  { %v158_v46 = vpop.f32.mrf.mxu1 }
  0x9e   :  { %v132_v24 = vpop.f32.mrf.mxu0 }
  0x9f   :  { %v133_v25 = vadd.f32 %v284_v23, %v132_v24 }
  0xa1   :  { %v152_v29 = vadd.f32 %v151_v21, %v133_v25 }
  0xa3   :  { %v169_v36 = vadd.f32 %v258_v30, %v152_v29 }
  0xa4   :  { %v137_v28 = vpop.f32.mrf.mxu2 }
  0xa5   :  { %v138_v32 = vadd.f32 %v284_v23, %v137_v28  ;;  %v173_v42 = vmax.f32 %v169_v36, 0.0 }
  0xa6   :  { %v134_v31 = vpop.f32.mrf.mxu0 }
  0xa7   :  { %v135_v33 = vadd.f32 %v284_v23, %v134_v31  ;;  %v157_v38 = vadd.f32 %v156_v27, %v138_v32 }
  0xa9   :  { %v154_v37 = vadd.f32 %v153_v22, %v135_v33  ;;  %v171_v47 = vadd.f32 %v262_v39, %v157_v38 }
  0xab   :  { %v170_v40 = vadd.f32 %v259_v34, %v154_v37  ;;  %v175_v51 = vmax.f32 %v171_v47, 0.0 }
  0xac   :  { %v139_v41 = vpop.f32.mrf.mxu2 }
  0xad   :  { %v174_v43 = vmax.f32 %v170_v40, 0.0  ;;  %v140_v44 = vadd.f32 %v284_v23, %v139_v41 }
  0xaf   :  { %v267_v48 = vpack.c.bf16 %v174_v43, %v173_v42  ;;  %v159_v49 = vadd.f32 %v158_v46, %v140_v44 }
  0xb1   :  { %268 = vst [vmem:[%s382_s4] sm:$0xff] %v267_v48   ;;  %v172_v50 = vadd.f32 %v263_v45, %v159_v49 }
  0xb3   :  { %v176_v52 = vmax.f32 %v172_v50, 0.0 }
  0xb5   :  { %v272_v53 = vpack.c.bf16 %v176_v52, %v175_v51 }
  0xb7   :  { %275 = vst [vmem:[%s382_s4 + $0x8] sm:$0xff] %v272_v53  }

// kernel: encoder_forward_pallas.9
= control target key start
LH: loop header
LB: loop body
LE: loop exit
PB: predicated region body
PF: predicated region fallthrough
CT: control target
= control target key end

     0   :  { %s343_s1 = inlined_call_operand.vmem [shape: bf16[256,128], index: 1, kind: input, shape index: {}]   ;;  %s344_s2 = inlined_call_operand.vmem [shape: f32[1,128], index: 2, kind: input, shape index: {}]   ;;  %s345_s0 = inlined_call_operand.vmem [shape: bf16[8,256], index: 0, kind: input, shape index: {}]   ;;  %s346_s3 = inlined_call_operand.vmem [shape: f32[8,128], index: 3, kind: output, shape index: {}]  }
   0x1   :  { %v256_v0 = vld [vmem:[%s343_s1 + $0x38] sm:$0xff]  ;;  %v255_v2 = vld [vmem:[%s343_s1 + $0x30] sm:$0xff]  ;;  %v254_v4 = vld [vmem:[%s343_s1 + $0x28] sm:$0xff] }
   0x2   :  { %v264_v1 = vld [vmem:[%s343_s1 + $0x78] sm:$0xff]  ;;  %154 = vmatpush.bf16.msra.mxu0 %v256_v0  ;;  %v263_v3 = vld [vmem:[%s343_s1 + $0x70] sm:$0xff]  ;;  %v262_v5 = vld [vmem:[%s343_s1 + $0x68] sm:$0xff] }
   0x3   :  { %167 = vmatpush.bf16.msra.mxu1 %v264_v1  ;;  %v253_v6 = vld [vmem:[%s343_s1 + $0x20] sm:$0xff]  ;;  %v252_v8 = vld [vmem:[%s343_s1 + $0x18] sm:$0xff]  ;;  %v251_v10 = vld [vmem:[%s343_s1 + $0x10] sm:$0xff] }
   0x4   :  { %v261_v7 = vld [vmem:[%s343_s1 + $0x60] sm:$0xff]  ;;  %v260_v9 = vld [vmem:[%s343_s1 + $0x58] sm:$0xff]  ;;  %v259_v11 = vld [vmem:[%s343_s1 + $0x50] sm:$0xff] }
   0x5   :  { %v250_v12 = vld [vmem:[%s343_s1 + $0x8] sm:$0xff]  ;;  %v14_v14 = vld [vmem:[%s345_s0] sm:$0xff] }
   0x6   :  { %155 = vmatpush.bf16.msra.mxu0 %v255_v2  ;;  %v258_v13 = vld [vmem:[%s343_s1 + $0x48] sm:$0xff]  ;;  %v52_v15 = vunpack.c.l.b16 %v14_v14  ;;  %v53_v16 = vunpack.c.h.b16 %v14_v14  ;;  %v249_v17 = vld [vmem:[%s343_s1] sm:$0xff] }
   0x7   :  { %168 = vmatpush.bf16.msra.mxu1 %v263_v3  ;;  %v257_v18 = vld [vmem:[%s343_s1 + $0x40] sm:$0xff] }
   0x8   :  { %v54_v19 = vpack.c.b16 %v52_v15, %v52_v15  ;;  %v55_v20 = vpack.c.b16 %v53_v16, %v53_v16  ;;  %v265_v21 = vld [vmem:[%s344_s2] ss:$0 sm:$0xff] }
   0xa   :  { %156 = vmatpush.bf16.msra.mxu0 %v254_v4 }
   0xb   :  { %169 = vmatpush.bf16.msra.mxu1 %v262_v5 }
   0xe   :  { %157 = vmatpush.bf16.msra.mxu0 %v253_v6 }
   0xf   :  { %170 = vmatpush.bf16.msra.mxu1 %v261_v7 }
  0x12   :  { %158 = vmatpush.bf16.msra.mxu0 %v252_v8 }
  0x13   :  { %171 = vmatpush.bf16.msra.mxu1 %v260_v9 }
  0x16   :  { %159 = vmatpush.bf16.msra.mxu0 %v251_v10 }
  0x17   :  { %172 = vmatpush.bf16.msra.mxu1 %v259_v11 }
  0x1a   :  { %160 = vmatpush.bf16.msra.mxu0 %v250_v12 }
  0x1b   :  { %173 = vmatpush.bf16.msra.mxu1 %v258_v13 }
  0x1e   :  { %161 = vmatpush.bf16.msra.mxu0 %v249_v17 }
  0x1f   :  { %174 = vmatpush.bf16.msra.mxu1 %v257_v18 }
  0x21   :  { %162 = vmatmul.bf16.vlgmr.msra.gmra.mxu0 %v54_v19 }
  0x22   :  { %175 = vmatmul.bf16.vlgmr.msra.gmra.mxu1 %v55_v20 }
  0x9e   :  { %v163_v22 = vpop.f32.mrf.mxu0 }
  0x9f   :  { %v176_v23 = vpop.f32.mrf.mxu1  ;;  %v164_v24 = vadd.f32 %v265_v21, %v163_v22 }
  0xa1   :  { %v177_v25 = vadd.f32 %v176_v23, %v164_v24 }
  0xa3   :  { %180 = vst [vmem:[%s346_s3] sm:$0xff] %v177_v25 }
  0xa6   :  { %v165_v26 = vpop.f32.mrf.mxu0 }
  0xa7   :  { %v178_v27 = vpop.f32.mrf.mxu1 }

</bundles_post_ra>
